<compile_context>
chip_gen: v7x
topology: tpu7x:2x2x1
jax: 0.10.0
libtpu: 0.0.40
codegen_flags: <defaults>
</compile_context>

<pallas_src>
import functools
import math

import jax
import jax.numpy as jnp
from jax import lax
from jax.experimental import pallas as pl
from jax.experimental.pallas import tpu as pltpu

DROPOUT_P = 0.2


def _ffn_kernel(x_ref, w1_ref, b1_ref, w2_ref, b2_ref, *rest, training):
    # x_ref: (TM, C) bf16   w1_ref: (C, TH) bf16   b1_ref: (1, TH) f32
    # w2_ref: (TH, C) bf16  b2_ref: (1, C) f32     [mask_ref: (TM, C) f32]
    # o_ref: (TM, C) f32    acc_ref: (TM, C) f32 scratch
    if training:
        mask_ref, o_ref, acc_ref = rest
    else:
        o_ref, acc_ref = rest
        mask_ref = None

    h_idx = pl.program_id(1)

    @pl.when(h_idx == 0)
    def _():
        acc_ref[...] = jnp.zeros_like(acc_ref)

    # Linear 1 on this hidden tile: (TM, C) @ (C, TH) -> (TM, TH), f32 accum.
    pre = jnp.dot(x_ref[...], w1_ref[...], preferred_element_type=jnp.float32)
    pre = pre + b1_ref[...]

    # Exact GELU (PyTorch nn.GELU default, approximate='none').
    act = 0.5 * pre * (1.0 + lax.erf(pre * (1.0 / math.sqrt(2.0))))

    # Linear 2 partial product over this hidden tile, accumulated in f32.
    acc_ref[...] += jnp.dot(act.astype(w2_ref.dtype), w2_ref[...],
                            preferred_element_type=jnp.float32)

    @pl.when(h_idx == pl.num_programs(1) - 1)
    def _():
        y = acc_ref[...] + b2_ref[...]
        if training:
            y = y * mask_ref[...]          # inverted dropout: 0 or 1/(1-p)
        o_ref[...] = y.astype(o_ref.dtype)


def _pick_tile(dim, target, aligns):
    """Largest divisor of `dim` <= target that is a multiple of one of `aligns`;
    falls back to the full dim (full-extent blocks are always legal)."""
    if dim <= target:
        return dim
    for align in aligns:
        t = (target // align) * align
        while t >= align:
            if dim % t == 0:
                return t
            t -= align
    return dim


def feed_forward(x, w1, b1, w2, b2, *, training=False, rng_key=None):
    """x: (B, T, C) float32 -> (B, T, C) float32."""
    B, T, C = x.shape
    H = w1.shape[1]
    N = B * T

    # bf16 streams, f32 accumulation in-kernel.
    x2d = x.reshape(N, C).astype(jnp.bfloat16)
    w1b = w1.astype(jnp.bfloat16)
    w2b = w2.astype(jnp.bfloat16)
    b1_2d = b1.reshape(1, H).astype(jnp.float32)
    b2_2d = b2.reshape(1, C).astype(jnp.float32)

    TM = _pick_tile(N, 512, (256, 128, 8))   # row tile (second-minor: mult of 8)
    TH = _pick_tile(H, 512, (256, 128))      # hidden tile (minor: mult of 128)
    grid = (N // TM, H // TH)

    in_specs = [
        pl.BlockSpec((TM, C), lambda i, h: (i, 0)),   # x row tile (reused over h)
        pl.BlockSpec((C, TH), lambda i, h: (0, h)),   # W1 hidden tile
        pl.BlockSpec((1, TH), lambda i, h: (0, h)),   # b1 hidden tile
        pl.BlockSpec((TH, C), lambda i, h: (h, 0)),   # W2 hidden tile
        pl.BlockSpec((1, C), lambda i, h: (0, 0)),    # b2 (VMEM-resident)
    ]
    args = [x2d, w1b, b1_2d, w2b, b2_2d]

    if training:
        if rng_key is None:
            rng_key = jax.random.PRNGKey(0)
        keep = jax.random.bernoulli(rng_key, 1.0 - DROPOUT_P, (N, C))
        mask = keep.astype(jnp.float32) * (1.0 / (1.0 - DROPOUT_P))
        in_specs.append(pl.BlockSpec((TM, C), lambda i, h: (i, 0)))
        args.append(mask)

    kernel = functools.partial(_ffn_kernel, training=training)

    out2d = pl.pallas_call(
        kernel,
        out_shape=jax.ShapeDtypeStruct((N, C), x.dtype),
        grid=grid,
        in_specs=in_specs,
        out_specs=pl.BlockSpec((TM, C), lambda i, h: (i, 0)),
        scratch_shapes=[pltpu.VMEM((TM, C), jnp.float32)],
        compiler_params=pltpu.CompilerParams(
            dimension_semantics=("parallel", "arbitrary"),
            vmem_limit_bytes=32 * 1024 * 1024,
        ),
    )(*args)

    return out2d.reshape(B, T, C)


def init_params(key, n_embds):
    """Mirror nn.Linear default init U(-1/sqrt(fan_in), +1/sqrt(fan_in))."""
    hidden = n_embds * 4
    k1, k2, k3, k4 = jax.random.split(key, 4)
    bound1 = 1.0 / math.sqrt(n_embds)
    bound2 = 1.0 / math.sqrt(hidden)
    # Stored as (in, out) so the kernel does x @ W directly.
    w1 = jax.random.uniform(k1, (n_embds, hidden), jnp.float32, -bound1, bound1)
    b1 = jax.random.uniform(k2, (hidden,), jnp.float32, -bound1, bound1)
    w2 = jax.random.uniform(k3, (hidden, n_embds), jnp.float32, -bound2, bound2)
    b2 = jax.random.uniform(k4, (n_embds,), jnp.float32, -bound2, bound2)
    return w1, b1, w2, b2


if __name__ == "__main__":
    key = jax.random.PRNGKey(0)
    n_embds = 32
    B, T = 2, 8

    kx, kp, kd = jax.random.split(key, 3)
    x = jax.random.normal(kx, (B, T, n_embds), jnp.float32)
    w1, b1, w2, b2 = init_params(kp, n_embds)

    # Eval mode (dropout = identity) vs pure-f32 JAX reference.
    y = feed_forward(x, w1, b1, w2, b2, training=False)
    y = jax.block_until_ready(y)

    h_ref = jnp.dot(x.reshape(-1, n_embds), w1) + b1
    h_ref = 0.5 * h_ref * (1.0 + lax.erf(h_ref / math.sqrt(2.0)))
    y_ref = (jnp.dot(h_ref, w2) + b2).reshape(B, T, n_embds)
    # bf16 weight/activation streams -> loose tolerance vs f32 reference.
    assert jnp.allclose(y, y_ref, atol=2e-2, rtol=2e-2), "mismatch vs reference"

    # Training mode: exercise the dropout path (mask generated in the wrapper).
    y_train = feed_forward(x, w1, b1, w2, b2, training=True, rng_key=kd)
    y_train = jax.block_until_ready(y_train)
    assert y_train.shape == (B, T, n_embds)
    assert bool(jnp.isfinite(y_train).all())

    print("KERNEL_OK")
</pallas_src>

<mosaic_0001>
module attributes {stable_mosaic.version = 11 : i64} {
  func.func @_ffn_kernel(%arg0: i32, %arg1: i32, %arg2: memref<16x32xbf16, #tpu.memory_space<vmem>>, %arg3: memref<32x128xbf16, #tpu.memory_space<vmem>>, %arg4: memref<1x128xf32, #tpu.memory_space<vmem>>, %arg5: memref<128x32xbf16, #tpu.memory_space<vmem>>, %arg6: memref<1x32xf32, #tpu.memory_space<vmem>>, %arg7: memref<16x32xf32, #tpu.memory_space<vmem>>, %arg8: memref<16x32xf32, #tpu.memory_space<vmem>>) attributes {dimension_semantics = [#tpu.dimension_semantics<parallel>, #tpu.dimension_semantics<arbitrary>], iteration_bounds = array<i64: 1, 1>, scalar_prefetch = 0 : i64, scratch_operands = 1 : i64, tpu.core_type = #tpu.core_type<tc>, window_params = [{transform_indices = @transform_0, window_bounds = array<i64: 16, 32>}, {transform_indices = @transform_1, window_bounds = array<i64: 32, 128>}, {transform_indices = @transform_2, window_bounds = array<i64: 1, 128>}, {transform_indices = @transform_3, window_bounds = array<i64: 128, 32>}, {pipeline_mode = #tpu.pipeline_mode<synchronous>, transform_indices = @transform_4, window_bounds = array<i64: 1, 32>}, {transform_indices = @transform_5, window_bounds = array<i64: 16, 32>}]} {
    %c0_i32 = arith.constant 0 : i32
    %0 = arith.cmpi eq, %arg1, %c0_i32 : i32
    %1 = arith.extui %0 : i1 to i32
    %c0_i32_0 = arith.constant 0 : i32
    %2 = arith.cmpi ne, %1, %c0_i32_0 : i32
    scf.if %2 {
      %cst_18 = arith.constant 0.000000e+00 : f32
      %26 = vector.broadcast %cst_18 : f32 to vector<16x32xf32>
      %c0_19 = arith.constant 0 : index
      %c0_20 = arith.constant 0 : index
      %27 = vector.load %arg8[%c0_19, %c0_20] : memref<16x32xf32, #tpu.memory_space<vmem>>, vector<16x32xf32>
      tpu.vector_store %arg8[%c0_19, %c0_20], %26 {strides = array<i32>} : memref<16x32xf32, #tpu.memory_space<vmem>>, vector<16x32xf32>,
    } else {
    }
    %c0 = arith.constant 0 : index
    %c0_1 = arith.constant 0 : index
    %3 = vector.load %arg2[%c0, %c0_1] : memref<16x32xbf16, #tpu.memory_space<vmem>>, vector<16x32xbf16>
    %c0_2 = arith.constant 0 : index
    %c0_3 = arith.constant 0 : index
    %4 = vector.load %arg3[%c0_2, %c0_3] : memref<32x128xbf16, #tpu.memory_space<vmem>>, vector<32x128xbf16>
    %cst = arith.constant dense<0.000000e+00> : vector<16x128xf32>
    %5 = tpu.matmul %3, %4, %cst {dimension_numbers = #tpu.dot_dimension_numbers<[1], [0], [0], [1], [0, 0, 1, 1], [], []>} : vector<16x32xbf16>, vector<32x128xbf16>, vector<16x128xf32> -> vector<16x128xf32>
    %c0_4 = arith.constant 0 : index
    %c0_5 = arith.constant 0 : index
    %6 = vector.load %arg4[%c0_4, %c0_5] : memref<1x128xf32, #tpu.memory_space<vmem>>, vector<1x128xf32>
    %7 = vector.broadcast %6 : vector<1x128xf32> to vector<16x128xf32>
    %8 = arith.addf %5, %7 : vector<16x128xf32>
    %cst_6 = arith.constant 5.000000e-01 : f32
    %9 = vector.broadcast %cst_6 : f32 to vector<16x128xf32>
    %10 = arith.mulf %9, %8 : vector<16x128xf32>
    %cst_7 = arith.constant 0.707106769 : f32
    %11 = vector.broadcast %cst_7 : f32 to vector<16x128xf32>
    %12 = arith.mulf %8, %11 : vector<16x128xf32>
    %13 = math.erf %12 : vector<16x128xf32>
    %cst_8 = arith.constant 1.000000e+00 : f32
    %14 = vector.broadcast %cst_8 : f32 to vector<16x128xf32>
    %15 = arith.addf %14, %13 : vector<16x128xf32>
    %16 = arith.mulf %10, %15 : vector<16x128xf32>
    %c0_9 = arith.constant 0 : index
    %c0_10 = arith.constant 0 : index
    %17 = vector.load %arg8[%c0_9, %c0_10] : memref<16x32xf32, #tpu.memory_space<vmem>>, vector<16x32xf32>
    %18 = arith.truncf %16 : vector<16x128xf32> to vector<16x128xbf16>
    %c0_11 = arith.constant 0 : index
    %c0_12 = arith.constant 0 : index
    %19 = vector.load %arg5[%c0_11, %c0_12] : memref<128x32xbf16, #tpu.memory_space<vmem>>, vector<128x32xbf16>
    %cst_13 = arith.constant dense<0.000000e+00> : vector<16x32xf32>
    %20 = tpu.matmul %18, %19, %cst_13 {dimension_numbers = #tpu.dot_dimension_numbers<[1], [0], [0], [1], [0, 0, 1, 1], [], []>} : vector<16x128xbf16>, vector<128x32xbf16>, vector<16x32xf32> -> vector<16x32xf32>
    %21 = arith.addf %17, %20 : vector<16x32xf32>
    %c0_14 = arith.constant 0 : index
    %c0_15 = arith.constant 0 : index
    %22 = vector.load %arg8[%c0_14, %c0_15] : memref<16x32xf32, #tpu.memory_space<vmem>>, vector<16x32xf32>
    tpu.vector_store %arg8[%c0_14, %c0_15], %21 {strides = array<i32>} : memref<16x32xf32, #tpu.memory_space<vmem>>, vector<16x32xf32>,
    %c0_i32_16 = arith.constant 0 : i32
    %23 = arith.cmpi eq, %arg1, %c0_i32_16 : i32
    %24 = arith.extui %23 : i1 to i32
    %c0_i32_17 = arith.constant 0 : i32
    %25 = arith.cmpi ne, %24, %c0_i32_17 : i32
    scf.if %25 {
      %c0_18 = arith.constant 0 : index
      %c0_19 = arith.constant 0 : index
      %26 = vector.load %arg8[%c0_18, %c0_19] : memref<16x32xf32, #tpu.memory_space<vmem>>, vector<16x32xf32>
      %c0_20 = arith.constant 0 : index
      %c0_21 = arith.constant 0 : index
      %27 = vector.load %arg6[%c0_20, %c0_21] : memref<1x32xf32, #tpu.memory_space<vmem>>, vector<1x32xf32>
      %28 = vector.broadcast %27 : vector<1x32xf32> to vector<16x32xf32>
      %29 = arith.addf %26, %28 : vector<16x32xf32>
      %c0_22 = arith.constant 0 : index
      %c0_23 = arith.constant 0 : index
      %30 = vector.load %arg7[%c0_22, %c0_23] : memref<16x32xf32, #tpu.memory_space<vmem>>, vector<16x32xf32>
      tpu.vector_store %arg7[%c0_22, %c0_23], %29 {strides = array<i32>} : memref<16x32xf32, #tpu.memory_space<vmem>>, vector<16x32xf32>,
    } else {
    }
    return
  }
  func.func @transform_0(%arg0: i32, %arg1: i32) -> (i32, i32) {
    %c0_i32 = arith.constant 0 : i32
    %c0_i32_0 = arith.constant 0 : i32
    return %arg0, %c0_i32 : i32, i32
  }
  func.func @transform_1(%arg0: i32, %arg1: i32) -> (i32, i32) {
    %c0_i32 = arith.constant 0 : i32
    %c0_i32_0 = arith.constant 0 : i32
    return %c0_i32, %arg1 : i32, i32
  }
  func.func @transform_2(%arg0: i32, %arg1: i32) -> (i32, i32) {
    %c0_i32 = arith.constant 0 : i32
    %c0_i32_0 = arith.constant 0 : i32
    return %c0_i32, %arg1 : i32, i32
  }
  func.func @transform_3(%arg0: i32, %arg1: i32) -> (i32, i32) {
    %c0_i32 = arith.constant 0 : i32
    %c0_i32_0 = arith.constant 0 : i32
    return %arg1, %c0_i32 : i32, i32
  }
  func.func @transform_4(%arg0: i32, %arg1: i32) -> (i32, i32) {
    %c0_i32 = arith.constant 0 : i32
    %c0_i32_0 = arith.constant 0 : i32
    %c0_i32_1 = arith.constant 0 : i32
    return %c0_i32, %c0_i32_0 : i32, i32
  }
  func.func @transform_5(%arg0: i32, %arg1: i32) -> (i32, i32) {
    %c0_i32 = arith.constant 0 : i32
    %c0_i32_0 = arith.constant 0 : i32
    return %arg0, %c0_i32 : i32, i32
  }
}

</mosaic_0001>

<bundles_post_ra>
// kernel: tpu_custom_call.1
= control target key start
LH: loop header
LB: loop body
LE: loop exit
PB: predicated region body
PF: predicated region fallthrough
CT: control target
= control target key end

     0   :  { %v356_v1 = vmov 0.0   ;;  %vm357_vm0 = vmmov 0   ;;  %vm26_vm1 = vcmask 261120   ;;  %s449_s0 = inlined_call_operand.vmem [shape: bf16[16,32], index: 0, kind: input, shape index: {}]   ;;  %s450_s1 = inlined_call_operand.vmem [shape: bf16[32,128], index: 1, kind: input, shape index: {}]   ;;  %s451_s2 = inlined_call_operand.vmem [shape: f32[1,128], index: 2, kind: input, shape index: {}]   ;;  %s452_s3 = inlined_call_operand.vmem [shape: bf16[128,32], index: 3, kind: input, shape index: {}]   ;;  %s453_s4 = inlined_call_operand.vmem [shape: f32[1,32], index: 4, kind: input, shape index: {}]   ;;  %s454_s5 = inlined_call_operand.hbm [shape: f32[16,32], index: 5, kind: output, shape index: {}]  }
   0x1   :  { %v317_v0 = vld [vmem:[%s450_s1] sm:$0xff]   ;;  %284 = vmatprep.subr.bf16.mxu0 %v356_v1  ;;  %292 = vmatprep.subr.bf16.mxu1 %v356_v1  ;;  %v318_v2 = vld [vmem:[%s450_s1 + $0x8] sm:$0xff]   ;;  %27 = vst.msk [vmem:[#allocation2] sm:$0xff] %vm26_vm1, %v356_v1  ;;  %28 = vst.msk [vmem:[#allocation2 + $0x8] sm:$0xff] %vm26_vm1, %v356_v1 }
   0x2   :  { %285 = vmatpush3.bf16.msra.mxu0 %v317_v0  ;;  %288 = vmatprep.mubr.msk.bf16.mxu0 %vm357_vm0, %v356_v1  ;;  %v320_v3 = vld [vmem:[%s452_s3] sm:$0xff]   ;;  %v321_v5 = vld [vmem:[%s452_s3 + $0x8] sm:$0xff]  }
   0x3   :  { %286 = vmatprep.subr.bf16.mxu0 %v356_v1  ;;  %308 = vmatprep.mubr.msk.bf16.mxu1 %vm357_vm0, %v356_v1  ;;  %v319_v4 = vld [vmem:[%s449_s0] sm:$0xff]  }
   0x4   :  { %293 = vmatpush3.bf16.msra.mxu1 %v320_v3 }
   0x5   :  { %294 = vmatprep.subr.bf16.mxu1 %v356_v1 }
   0x6   :  { %287 = vmatpush3.bf16.msra.mxu0 %v318_v2 }
   0x8   :  { %295 = vmatpush3.bf16.msra.mxu1 %v321_v5 }
   0x9   :  { %289 = vmatmul.mubr.msk.bf16.vlgmr.msra.gmra.mrb[0].mxu0 %vm26_vm1, %v319_v4 }
   0xa   :  { %10 = vsyncpa [#allocation4], 0  ;;  %296 = vmatprep.subr.bf16.mxu1 %v356_v1  ;;  %v322_v6 = vld [vmem:[%s452_s3 + $0x10] sm:$0xff]   ;;  %v323_v7 = vld [vmem:[%s452_s3 + $0x18] sm:$0xff]   ;;  %s358_s15 = smov [#allocation3]  }
   0xb   :  { %v324_v8 = vld [vmem:[%s452_s3 + $0x20] sm:$0xff]   ;;  %v325_v9 = vld [vmem:[%s452_s3 + $0x28] sm:$0xff]   ;;  %v326_v10 = vld [vmem:[%s452_s3 + $0x30] sm:$0xff]   ;;  %s247_s16 = sshll.u32 %s358_s15, 4  ;;  %s248_s16 = int_to_ptr.vmem [resolvable:$true] %s247_s16 }
   0xc   :  { %297 = vmatpush3.bf16.msra.mxu1 %v322_v6  ;;  %v327_v11 = vld [vmem:[%s452_s3 + $0x38] sm:$0xff]   ;;  %v258_v12 = vld [vmem:[%s451_s2] ss:$0 sm:$0xff]  ;;  %v115_v32 = vld [vmem:[#allocation2 + $0x8] sm:$0xff]  ;;  %s332_s17 = scalar_lea.vmem %s248_s16, 256  ;;  %p337_p1 = scmp.lt.s32.totalorder %s248_s16, %s248_s16 }
   0xd   :  { %298 = vmatprep.subr.bf16.mxu1 %v356_v1  ;;  %v114_v30 = vld [vmem:[#allocation2] sm:$0xff]  ;;  %p333_p0 = scmp.ne.s32.totalorder %s248_s16, %s332_s17  ;;  %p338_p2 = scmp.lt.s32.totalorder %s332_s17, %s332_s17 }
   0xe   :  { %v271_v38 = vld [vmem:[%s453_s4] ss:$0 sm:$0xff] }
   0xf   :  { %p339_p3 = por %p338_p2, %p337_p1 }
  0x10   :  { %299 = vmatpush3.bf16.msra.mxu1 %v323_v7 }
  0x11   :  { %300 = vmatprep.subr.bf16.mxu1 %v356_v1  ;;  %p340_p4 = pnand %p339_p3, %p333_p0 }
  0x14   :  { %301 = vmatpush3.bf16.msra.mxu1 %v324_v8 }
  0x15   :  { %302 = vmatprep.subr.bf16.mxu1 %v356_v1 }
  0x18   :  { %303 = vmatpush3.bf16.msra.mxu1 %v325_v9 }
  0x19   :  { %304 = vmatprep.subr.bf16.mxu1 %v356_v1 }
  0x1c   :  { %305 = vmatpush3.bf16.msra.mxu1 %v326_v10 }
  0x1d   :  { %306 = vmatprep.subr.bf16.mxu1 %v356_v1 }
  0x20   :  { %307 = vmatpush3.bf16.msra.mxu1 %v327_v11 }
  0xdc   :  { %v97_v13 = vpop.f32.mrb[0].mxu0 }
  0xdd   :  { %v98_v14 = vadd.f32 %v258_v12, %v97_v13  ;;  %v290_v15 = vpop.f32.mrb[1].mxu0 }
  0xde   :  { %v100_v16 = vpop.f32.mrb[2].mxu0 }
  0xdf   :  { %v106_v17 = vmul.f32 0.70710677, %v98_v14  ;;  %v101_v18 = vadd.f32 %v258_v12, %v100_v16  ;;  %v291_v19 = vpop.f32.mrb[3].mxu0  ;;  %v104_v24 = vmul.f32 0.5, %v98_v14 }
  0xe1   :  { %328 = verf.f32 %v106_v17  ;;  %v107_v20 = vmul.f32 0.70710677, %v101_v18  ;;  %v105_v25 = vmul.f32 0.5, %v101_v18 }
  0xe3   :  { %330 = verf.f32 %v107_v20 }
  0xeb   :  { %v329_v21 = vpop.eup %328 }
  0xec   :  { %v110_v22 = vadd.f32 1.0, %v329_v21 }
  0xed   :  { %v331_v23 = vpop.eup %330 }
  0xee   :  { %v111_v26 = vadd.f32 1.0, %v331_v23  ;;  %v112_v27 = vmul.f32 %v110_v22, %v104_v24 }
  0xf0   :  { %v113_v28 = vmul.f32 %v111_v26, %v105_v25 }
  0xf2   :  { %v116_v29 = vpack.c.bf16 %v113_v28, %v112_v27 }
  0xf4   :  { %309 = vmatmul.mubr.bf16.vlgmr.msra.gmra.mrb[0].mxu1 %v116_v29 }
 0x1c7   :  { %v215_v31 = vpop.f32.mrb[0].mxu1 }
 0x1c8   :  { %v222_v33 = vadd.f32 %v215_v31, %v114_v30  ;;  %v310_v34 = vpop.f32.mrb[1].mxu1 }
 0x1c9   :  { %v218_v35 = vpop.f32.mrb[2].mxu1 }
 0x1ca   :  { %224 = vst.msk [vmem:[#allocation2] sm:$0xff] %vm26_vm1, %v222_v33  ;;  %v223_v36 = vadd.f32 %v218_v35, %v115_v32  ;;  %v311_v37 = vpop.f32.mrb[3].mxu1 }
 0x1cc   :  { %225 = vst.msk [vmem:[#allocation2 + $0x8] sm:$0xff] %vm26_vm1, %v223_v36 }
 0x1d1   :  { %v229_v39 = vld [vmem:[#allocation2] sm:$0xff] }
 0x1d2   :  { %v238_v40 = vadd.f32 %v271_v38, %v229_v39 }
 0x1d3   :  { %v230_v41 = vld [vmem:[#allocation2 + $0x8] sm:$0xff] }
 0x1d4   :  { %v239_v42 = vadd.f32 %v271_v38, %v230_v41  ;;  %240 = vst.msk [vmem:[#allocation3] sm:$0xff] %vm26_vm1, %v238_v40 }
 0x1d6   :  { %241 = vst.msk [vmem:[#allocation3 + $0x8] sm:$0xff] %vm26_vm1, %v239_v42 }
 0x1d7   :  { %343 = shalt.err (!%p340_p4)
}
 0x1d8   :  { %s344_s19 = scalar_lea.hbm %s454_s5, 256 }
 0x1d9   :  { %p345_p5 = scmp.ne.s32.totalorder %s454_s5, %s344_s19  ;;  %p348_p6 = scmp.lt.u32.totalorder %s344_s19, %s454_s5 }
 0x1db   :  { %p350_p7 = pnand %p348_p6, %p345_p5 }
 0x1dd   :  { %353 = shalt.err (!%p350_p7)
}
 0x1de   :  { %s359_s24 = smov 128   ;;  %s360_s25 = smov 8  }
 0x1df   :  { %253 = dma.vmem_to_hbm [thread:$0]  %s248_s16, 256, %s454_s5, [#allocation4], %s359_s24, %s359_s24, %s360_s25  }
 0x1e0   :  { %354 = dma.done.wait [#allocation4], 256  }
 0x1e1   :  { %355 = vsyncadd [#allocation4], 4294967040 }
 0x1e2   :  { %257 = vsyncpa [#allocation4], 1 }

</bundles_post_ra>
